<compile_context>
chip_gen: v7x
topology: tpu7x:2x2x1
jax: 0.10.0
libtpu: 0.0.40
codegen_flags: <defaults>
</compile_context>

<pallas_src>
import jax
import jax.numpy as jnp
from jax import lax
from jax.experimental import pallas as pl
from jax.experimental.pallas import tpu as pltpu

K = 5      # conv kernel size
PAD = 2    # conv padding (same, stride=1)


def _make_block_kernel(NB, Cin, Cout, L, compute_dtype, out_dtype):
    """Kernel factory; all shapes static per pallas_call."""
    W = NB * L
    use_im2col_1 = Cin < 128    # contraction depth K*Cin still below MXU K dim
    use_im2col_2 = Cout < 128

    def block_kernel(x_ref, w1_ref, w2_ref, o_ref):
        # x_ref : (NB, Cin, L)    NCL layout, L on the lane axis
        # w1_ref: (Cout, K*Cin)   im2col-folded conv1 weight (already compute_dtype)
        # w2_ref: (Cout, K*Cout)  im2col-folded conv2 weight
        # o_ref : (NB, Cout, L)
        w1 = w1_ref[...]
        w2 = w2_ref[...]

        # ---- hoisted constants: one iota, K per-tap boundary masks (built once per
        #      grid step, reused by both convs). lane_local is the position inside a
        #      sample; masking it implements the zero padding AND prevents the rolled
        #      taps from reading the neighbouring sample in the fused slab.
        lane = lax.broadcasted_iota(jnp.int32, (1, W), 1)
        lane_local = lane % L if NB > 1 else lane
        masks = []
        for k in range(K):
            s = PAD - k
            masks.append((lane_local >= s) & (lane_local < L + s))

        def taps(v):
            # v: (C, W) -> K masked lane-rolled taps, tap k holds x[:, l + k - PAD]
            out = []
            for k in range(K):
                s = PAD - k
                t = v if s == 0 else pltpu.roll(v, shift=s % W, axis=1)
                out.append(jnp.where(masks[k], t, jnp.zeros_like(t)))
            return out

        def conv(v, w, C, use_im2col):
            # v: (C, W) compute_dtype, w: (Cout, K*C) -> (Cout, W) f32 accumulation
            ts = taps(v)
            if use_im2col:
                cols = jnp.concatenate(ts, axis=0)                      # (K*C, W)
                return jnp.dot(w, cols, preferred_element_type=jnp.float32)
            # Large-C path: contraction already deep enough, avoid 5x stacking.
            acc = jnp.dot(w[:, :C], ts[0], preferred_element_type=jnp.float32)
            for k in range(1, K):
                acc = acc + jnp.dot(w[:, k * C:(k + 1) * C], ts[k],
                                    preferred_element_type=jnp.float32)
            return acc

        # ---- fold NB samples into one lane-wide slab (Cin, NB*L)
        if NB > 1:
            x_slab = jnp.concatenate([x_ref[b] for b in range(NB)], axis=-1)
        else:
            x_slab = x_ref[0]
        x_res = x_slab.astype(jnp.float32)        # residual path stays f32
        xc = x_slab.astype(compute_dtype)

        # conv1 + relu  (one wide MXU matmul over NB*L lanes)
        h = jnp.maximum(conv(xc, w1, Cin, use_im2col_1), 0.0)           # (Cout, W) f32
        # conv2 + relu  (no VMEM scratch round-trip for the intermediate)
        y = jnp.maximum(conv(h.astype(compute_dtype), w2, Cout, use_im2col_2), 0.0)
        # residual add (downsample=None, stride=1) + final relu, f32
        out = jnp.maximum(y + x_res, 0.0)                               # (Cout, W)

        # per-sample store back to the NCL output block (static, lane-contig slices)
        if NB > 1:
            for b in range(NB):
                o_ref[b] = out[:, b * L:(b + 1) * L].astype(out_dtype)
        else:
            o_ref[0] = out.astype(out_dtype)

    return block_kernel


def _pick_batch_fold(N, Cin, Cout, L, in_itemsize, cmp_itemsize,
                     max_fold=8, vmem_budget=8 << 20):
    """Largest divisor of N folded per grid step, subject to:
       * grid length >= 2 whenever N >= 2 (keeps both v7x TensorCores busy),
       * a conservative VMEM estimate (double-buffered I/O blocks + im2col
         intermediates) that fits the smallest default scoped VMEM (v5e 16 MiB,
         v7x 32 MiB default / 64 MiB physical)."""
    best = 1
    for nb in range(1, min(max_fold, N) + 1):
        if N % nb:
            continue
        if N >= 2 and N // nb < 2:
            continue
        W = nb * L
        io_bytes = 2 * nb * L * (Cin + Cout) * in_itemsize        # double-buffered in+out
        interm = K * max(Cin, Cout) * W * cmp_itemsize + 3 * Cout * W * 4
        if io_bytes + interm <= vmem_budget:
            best = nb
    return best


def block_forward(x_ncl, w1_oik, w2_oik, compute_dtype=None, max_fold=8):
    """PyTorch-facing forward.

    x_ncl  : (N, C, L)        like torch Conv1d input
    w*_oik : (Cout, Cin, K)   like torch Conv1d weight
    compute_dtype : MXU operand dtype (use jnp.bfloat16 on v6e/v7x; accumulation,
                    residual and relus stay f32).  Default: x dtype.
    returns (N, Cout, L)
    """
    N, Cin, L = x_ncl.shape
    Cout, Cin_w, Kw = w1_oik.shape
    assert Kw == K and Cin_w == Cin
    assert w2_oik.shape == (Cout, Cout, K)
    # downsample=None + stride=1 residual path requires matching channel counts.
    assert Cin == Cout, "Block with downsample=None needs inplanes == outplanes"

    if compute_dtype is None:
        compute_dtype = x_ncl.dtype

    # Fold conv weights into im2col matrices (tiny; done once in the wrapper) and
    # pre-cast to the MXU operand dtype so there is no per-grid-step cast.
    # w2d[co, k*Cin + ci] = w[co, ci, k]
    w1_2d = jnp.transpose(w1_oik, (0, 2, 1)).reshape(Cout, K * Cin).astype(compute_dtype)
    w2_2d = jnp.transpose(w2_oik, (0, 2, 1)).reshape(Cout, K * Cout).astype(compute_dtype)

    NB = _pick_batch_fold(N, Cin, Cout, L,
                          jnp.dtype(x_ncl.dtype).itemsize,
                          jnp.dtype(compute_dtype).itemsize,
                          max_fold=max_fold)
    grid = (N // NB,)

    kernel = _make_block_kernel(NB, Cin, Cout, L, compute_dtype, x_ncl.dtype)

    return pl.pallas_call(
        kernel,
        out_shape=jax.ShapeDtypeStruct((N, Cout, L), x_ncl.dtype),
        grid_spec=pltpu.PrefetchScalarGridSpec(
            num_scalar_prefetch=0,
            grid=grid,
            in_specs=[
                pl.BlockSpec((NB, Cin, L), lambda n: (n, 0, 0)),
                pl.BlockSpec((Cout, K * Cin), lambda n: (0, 0)),
                pl.BlockSpec((Cout, K * Cout), lambda n: (0, 0)),
            ],
            out_specs=pl.BlockSpec((NB, Cout, L), lambda n: (n, 0, 0)),
        ),
        compiler_params=pltpu.CompilerParams(
            dimension_semantics=("parallel",)),
    )(x_ncl, w1_2d, w2_2d)


# ---------------- pure-JAX reference (mirrors the torch module) ----------------
def _conv1d_ref(x_ncl, w_oik):
    return lax.conv_general_dilated(
        x_ncl, w_oik, window_strides=(1,), padding=[(PAD, PAD)],
        dimension_numbers=("NCH", "OIH", "NCH"))


def block_ref(x_ncl, w1_oik, w2_oik):
    out = jnp.maximum(_conv1d_ref(x_ncl, w1_oik), 0.0)   # conv1 + relu (bn=False)
    out = jnp.maximum(_conv1d_ref(out, w2_oik), 0.0)     # conv2 + relu
    out = out + x_ncl                                    # residual (downsample=None)
    return jnp.maximum(out, 0.0)


if __name__ == "__main__":
    key = jax.random.PRNGKey(0)
    kx, k1, k2 = jax.random.split(key, 3)

    # Small shape consistent with the module (inplanes == outplanes required).
    N, C, L = 2, 8, 16
    x = jax.random.normal(kx, (N, C, L), dtype=jnp.float32)            # NCL
    w1 = 0.1 * jax.random.normal(k1, (C, C, K), dtype=jnp.float32)     # (Cout,Cin,K)
    w2 = 0.1 * jax.random.normal(k2, (C, C, K), dtype=jnp.float32)

    out = jax.block_until_ready(block_forward(x, w1, w2))
    ref = block_ref(x, w1, w2)
    assert out.shape == ref.shape == (N, C, L)
    assert jnp.allclose(out, ref, atol=1e-5, rtol=1e-5), "mismatch vs reference (f32)"

    # Slightly larger shape: exercises the fused NB>1 wide-matmul path (grid >= 2).
    N2, L2 = 8, 128
    x2 = jax.random.normal(kx, (N2, C, L2), dtype=jnp.float32)
    out2 = jax.block_until_ready(block_forward(x2, w1, w2))
    ref2 = block_ref(x2, w1, w2)
    assert jnp.allclose(out2, ref2, atol=1e-4, rtol=1e-4), "mismatch vs reference (fold)"

    # bf16 MXU-operand path (v6e/v7x); loose tolerance by design (mixed precision).
    out_bf = jax.block_until_ready(
        block_forward(x2, w1, w2, compute_dtype=jnp.bfloat16))
    assert jnp.max(jnp.abs(out_bf - ref2)) < 1e-1, "mismatch vs reference (bf16)"

    print("KERNEL_OK")
</pallas_src>

<mosaic_0001>
module attributes {stable_mosaic.version = 11 : i64} {
  func.func @block_kernel(%arg0: i32, %arg1: memref<1x8x16xf32, #tpu.memory_space<vmem>>, %arg2: memref<8x40xf32, #tpu.memory_space<vmem>>, %arg3: memref<8x40xf32, #tpu.memory_space<vmem>>, %arg4: memref<1x8x16xf32, #tpu.memory_space<vmem>>) attributes {dimension_semantics = [#tpu.dimension_semantics<parallel>], iteration_bounds = array<i64: 2>, scalar_prefetch = 0 : i64, scratch_operands = 0 : i64, tpu.core_type = #tpu.core_type<tc>, window_params = [{transform_indices = @transform_0, window_bounds = array<i64: 1, 8, 16>}, {pipeline_mode = #tpu.pipeline_mode<synchronous>, transform_indices = @transform_1, window_bounds = array<i64: 8, 40>}, {pipeline_mode = #tpu.pipeline_mode<synchronous>, transform_indices = @transform_2, window_bounds = array<i64: 8, 40>}, {transform_indices = @transform_3, window_bounds = array<i64: 1, 8, 16>}]} {
    %c0 = arith.constant 0 : index
    %c0_0 = arith.constant 0 : index
    %0 = vector.load %arg2[%c0, %c0_0] : memref<8x40xf32, #tpu.memory_space<vmem>>, vector<8x40xf32>
    %c0_1 = arith.constant 0 : index
    %c0_2 = arith.constant 0 : index
    %1 = vector.load %arg3[%c0_1, %c0_2] : memref<8x40xf32, #tpu.memory_space<vmem>>, vector<8x40xf32>
    %2 = tpu.iota {dimensions = array<i32: 1>} : vector<1x16xi32>
    %c2_i32 = arith.constant 2 : i32
    %3 = vector.broadcast %c2_i32 : i32 to vector<1x16xi32>
    %4 = arith.cmpi sge, %2, %3 : vector<1x16xi32>
    %c18_i32 = arith.constant 18 : i32
    %5 = vector.broadcast %c18_i32 : i32 to vector<1x16xi32>
    %6 = arith.cmpi slt, %2, %5 : vector<1x16xi32>
    %7 = arith.andi %4, %6 : vector<1x16xi1>
    %c1_i32 = arith.constant 1 : i32
    %8 = vector.broadcast %c1_i32 : i32 to vector<1x16xi32>
    %9 = arith.cmpi sge, %2, %8 : vector<1x16xi32>
    %c17_i32 = arith.constant 17 : i32
    %10 = vector.broadcast %c17_i32 : i32 to vector<1x16xi32>
    %11 = arith.cmpi slt, %2, %10 : vector<1x16xi32>
    %12 = arith.andi %9, %11 : vector<1x16xi1>
    %c0_i32 = arith.constant 0 : i32
    %13 = vector.broadcast %c0_i32 : i32 to vector<1x16xi32>
    %14 = arith.cmpi sge, %2, %13 : vector<1x16xi32>
    %c16_i32 = arith.constant 16 : i32
    %15 = vector.broadcast %c16_i32 : i32 to vector<1x16xi32>
    %16 = arith.cmpi slt, %2, %15 : vector<1x16xi32>
    %17 = arith.andi %14, %16 : vector<1x16xi1>
    %c-1_i32 = arith.constant -1 : i32
    %18 = vector.broadcast %c-1_i32 : i32 to vector<1x16xi32>
    %19 = arith.cmpi sge, %2, %18 : vector<1x16xi32>
    %c15_i32 = arith.constant 15 : i32
    %20 = vector.broadcast %c15_i32 : i32 to vector<1x16xi32>
    %21 = arith.cmpi slt, %2, %20 : vector<1x16xi32>
    %22 = arith.andi %19, %21 : vector<1x16xi1>
    %c-2_i32 = arith.constant -2 : i32
    %23 = vector.broadcast %c-2_i32 : i32 to vector<1x16xi32>
    %24 = arith.cmpi sge, %2, %23 : vector<1x16xi32>
    %c14_i32 = arith.constant 14 : i32
    %25 = vector.broadcast %c14_i32 : i32 to vector<1x16xi32>
    %26 = arith.cmpi slt, %2, %25 : vector<1x16xi32>
    %27 = arith.andi %24, %26 : vector<1x16xi1>
    %c0_3 = arith.constant 0 : index
    %c0_4 = arith.constant 0 : index
    %c0_5 = arith.constant 0 : index
    %28 = vector.load %arg1[%c0_3, %c0_4, %c0_5] : memref<1x8x16xf32, #tpu.memory_space<vmem>>, vector<1x8x16xf32>
    %29 = vector.shape_cast %28 : vector<1x8x16xf32> to vector<8x16xf32>
    %c2_i32_6 = arith.constant 2 : i32
    %30 = tpu.dynamic_rotate %29 by %c2_i32_6 dim 1 : vector<8x16xf32>, i32 -> vector<8x16xf32>
    %cst = arith.constant 0.000000e+00 : f32
    %31 = vector.broadcast %cst : f32 to vector<8x16xf32>
    %32 = vector.shape_cast %7 : vector<1x16xi1> to vector<1x16xi1>
    %33 = vector.broadcast %32 : vector<1x16xi1> to vector<8x16xi1>
    %34 = arith.select %33, %30, %31 : vector<8x16xi1>, vector<8x16xf32>
    %c1_i32_7 = arith.constant 1 : i32
    %35 = tpu.dynamic_rotate %29 by %c1_i32_7 dim 1 : vector<8x16xf32>, i32 -> vector<8x16xf32>
    %cst_8 = arith.constant 0.000000e+00 : f32
    %36 = vector.broadcast %cst_8 : f32 to vector<8x16xf32>
    %37 = vector.shape_cast %12 : vector<1x16xi1> to vector<1x16xi1>
    %38 = vector.broadcast %37 : vector<1x16xi1> to vector<8x16xi1>
    %39 = arith.select %38, %35, %36 : vector<8x16xi1>, vector<8x16xf32>
    %cst_9 = arith.constant 0.000000e+00 : f32
    %40 = vector.broadcast %cst_9 : f32 to vector<8x16xf32>
    %41 = vector.shape_cast %17 : vector<1x16xi1> to vector<1x16xi1>
    %42 = vector.broadcast %41 : vector<1x16xi1> to vector<8x16xi1>
    %43 = arith.select %42, %29, %40 : vector<8x16xi1>, vector<8x16xf32>
    %c15_i32_10 = arith.constant 15 : i32
    %44 = tpu.dynamic_rotate %29 by %c15_i32_10 dim 1 : vector<8x16xf32>, i32 -> vector<8x16xf32>
    %cst_11 = arith.constant 0.000000e+00 : f32
    %45 = vector.broadcast %cst_11 : f32 to vector<8x16xf32>
    %46 = vector.shape_cast %22 : vector<1x16xi1> to vector<1x16xi1>
    %47 = vector.broadcast %46 : vector<1x16xi1> to vector<8x16xi1>
    %48 = arith.select %47, %44, %45 : vector<8x16xi1>, vector<8x16xf32>
    %c14_i32_12 = arith.constant 14 : i32
    %49 = tpu.dynamic_rotate %29 by %c14_i32_12 dim 1 : vector<8x16xf32>, i32 -> vector<8x16xf32>
    %cst_13 = arith.constant 0.000000e+00 : f32
    %50 = vector.broadcast %cst_13 : f32 to vector<8x16xf32>
    %51 = vector.shape_cast %27 : vector<1x16xi1> to vector<1x16xi1>
    %52 = vector.broadcast %51 : vector<1x16xi1> to vector<8x16xi1>
    %53 = arith.select %52, %49, %50 : vector<8x16xi1>, vector<8x16xf32>
    %54 = tpu.concatenate %34, %39, %43, %48, %53 in 0 : vector<8x16xf32>, vector<8x16xf32>, vector<8x16xf32>, vector<8x16xf32>, vector<8x16xf32> -> vector<40x16xf32>
    %cst_14 = arith.constant dense<0.000000e+00> : vector<8x16xf32>
    %55 = tpu.matmul %0, %54, %cst_14 {dimension_numbers = #tpu.dot_dimension_numbers<[1], [0], [0], [1], [0, 0, 1, 1], [], []>} : vector<8x40xf32>, vector<40x16xf32>, vector<8x16xf32> -> vector<8x16xf32>
    %cst_15 = arith.constant 0.000000e+00 : f32
    %56 = vector.broadcast %cst_15 : f32 to vector<8x16xf32>
    %57 = arith.maximumf %55, %56 : vector<8x16xf32>
    %c2_i32_16 = arith.constant 2 : i32
    %58 = tpu.dynamic_rotate %57 by %c2_i32_16 dim 1 : vector<8x16xf32>, i32 -> vector<8x16xf32>
    %cst_17 = arith.constant 0.000000e+00 : f32
    %59 = vector.broadcast %cst_17 : f32 to vector<8x16xf32>
    %60 = vector.shape_cast %7 : vector<1x16xi1> to vector<1x16xi1>
    %61 = vector.broadcast %60 : vector<1x16xi1> to vector<8x16xi1>
    %62 = arith.select %61, %58, %59 : vector<8x16xi1>, vector<8x16xf32>
    %c1_i32_18 = arith.constant 1 : i32
    %63 = tpu.dynamic_rotate %57 by %c1_i32_18 dim 1 : vector<8x16xf32>, i32 -> vector<8x16xf32>
    %cst_19 = arith.constant 0.000000e+00 : f32
    %64 = vector.broadcast %cst_19 : f32 to vector<8x16xf32>
    %65 = vector.shape_cast %12 : vector<1x16xi1> to vector<1x16xi1>
    %66 = vector.broadcast %65 : vector<1x16xi1> to vector<8x16xi1>
    %67 = arith.select %66, %63, %64 : vector<8x16xi1>, vector<8x16xf32>
    %cst_20 = arith.constant 0.000000e+00 : f32
    %68 = vector.broadcast %cst_20 : f32 to vector<8x16xf32>
    %69 = vector.shape_cast %17 : vector<1x16xi1> to vector<1x16xi1>
    %70 = vector.broadcast %69 : vector<1x16xi1> to vector<8x16xi1>
    %71 = arith.select %70, %57, %68 : vector<8x16xi1>, vector<8x16xf32>
    %c15_i32_21 = arith.constant 15 : i32
    %72 = tpu.dynamic_rotate %57 by %c15_i32_21 dim 1 : vector<8x16xf32>, i32 -> vector<8x16xf32>
    %cst_22 = arith.constant 0.000000e+00 : f32
    %73 = vector.broadcast %cst_22 : f32 to vector<8x16xf32>
    %74 = vector.shape_cast %22 : vector<1x16xi1> to vector<1x16xi1>
    %75 = vector.broadcast %74 : vector<1x16xi1> to vector<8x16xi1>
    %76 = arith.select %75, %72, %73 : vector<8x16xi1>, vector<8x16xf32>
    %c14_i32_23 = arith.constant 14 : i32
    %77 = tpu.dynamic_rotate %57 by %c14_i32_23 dim 1 : vector<8x16xf32>, i32 -> vector<8x16xf32>
    %cst_24 = arith.constant 0.000000e+00 : f32
    %78 = vector.broadcast %cst_24 : f32 to vector<8x16xf32>
    %79 = vector.shape_cast %27 : vector<1x16xi1> to vector<1x16xi1>
    %80 = vector.broadcast %79 : vector<1x16xi1> to vector<8x16xi1>
    %81 = arith.select %80, %77, %78 : vector<8x16xi1>, vector<8x16xf32>
    %82 = tpu.concatenate %62, %67, %71, %76, %81 in 0 : vector<8x16xf32>, vector<8x16xf32>, vector<8x16xf32>, vector<8x16xf32>, vector<8x16xf32> -> vector<40x16xf32>
    %cst_25 = arith.constant dense<0.000000e+00> : vector<8x16xf32>
    %83 = tpu.matmul %1, %82, %cst_25 {dimension_numbers = #tpu.dot_dimension_numbers<[1], [0], [0], [1], [0, 0, 1, 1], [], []>} : vector<8x40xf32>, vector<40x16xf32>, vector<8x16xf32> -> vector<8x16xf32>
    %cst_26 = arith.constant 0.000000e+00 : f32
    %84 = vector.broadcast %cst_26 : f32 to vector<8x16xf32>
    %85 = arith.maximumf %83, %84 : vector<8x16xf32>
    %86 = arith.addf %85, %29 : vector<8x16xf32>
    %cst_27 = arith.constant 0.000000e+00 : f32
    %87 = vector.broadcast %cst_27 : f32 to vector<8x16xf32>
    %88 = arith.maximumf %86, %87 : vector<8x16xf32>
    %c0_28 = arith.constant 0 : index
    %c0_29 = arith.constant 0 : index
    %c0_30 = arith.constant 0 : index
    %89 = vector.load %arg4[%c0_28, %c0_29, %c0_30] : memref<1x8x16xf32, #tpu.memory_space<vmem>>, vector<1x8x16xf32>
    %90 = vector.shape_cast %89 : vector<1x8x16xf32> to vector<8x16xf32>
    %91 = vector.shape_cast %88 : vector<8x16xf32> to vector<1x8x16xf32>
    tpu.vector_store %arg4[%c0_28, %c0_29, %c0_30], %91 {strides = array<i32>} : memref<1x8x16xf32, #tpu.memory_space<vmem>>, vector<1x8x16xf32>,
    return
  }
  func.func @transform_0(%arg0: i32) -> (i32, i32, i32) {
    %c0_i32 = arith.constant 0 : i32
    %c0_i32_0 = arith.constant 0 : i32
    %c0_i32_1 = arith.constant 0 : i32
    return %arg0, %c0_i32, %c0_i32_0 : i32, i32, i32
  }
  func.func @transform_1(%arg0: i32) -> (i32, i32) {
    %c0_i32 = arith.constant 0 : i32
    %c0_i32_0 = arith.constant 0 : i32
    %c0_i32_1 = arith.constant 0 : i32
    return %c0_i32, %c0_i32_0 : i32, i32
  }
  func.func @transform_2(%arg0: i32) -> (i32, i32) {
    %c0_i32 = arith.constant 0 : i32
    %c0_i32_0 = arith.constant 0 : i32
    %c0_i32_1 = arith.constant 0 : i32
    return %c0_i32, %c0_i32_0 : i32, i32
  }
  func.func @transform_3(%arg0: i32) -> (i32, i32, i32) {
    %c0_i32 = arith.constant 0 : i32
    %c0_i32_0 = arith.constant 0 : i32
    %c0_i32_1 = arith.constant 0 : i32
    return %arg0, %c0_i32, %c0_i32_0 : i32, i32, i32
  }
}

</mosaic_0001>

<bundles_post_ra>
// kernel: tpu_custom_call.1
= control target key start
LH: loop header
LB: loop body
LE: loop exit
PB: predicated region body
PF: predicated region fallthrough
CT: control target
= control target key end

     0   :  { %8 = vsyncpa [#allocation3], 0  ;;  %s1179_s0 = inlined_call_operand.hbm [shape: f32[2,8,16], index: 0, kind: input, shape index: {}]   ;;  %s1180_s1 = inlined_call_operand.hbm [shape: f32[8,40], index: 1, kind: input, shape index: {}]   ;;  %s1181_s2 = inlined_call_operand.hbm [shape: f32[8,40], index: 2, kind: input, shape index: {}]   ;;  %s1182_s3 = inlined_call_operand.hbm [shape: f32[2,8,16], index: 3, kind: output, shape index: {}]  }
   0x1   :  { %10 = vsyncpa [#allocation3 + $0x1], 0 }
   0x2   :  { %11 = vsyncpa [#allocation6], 0 }
   0x3   :  { %12 = vsyncpa [#allocation4], 0 }
   0x4   :  { %14 = vsyncpa [#allocation4 + $0x1], 0  ;;  %s893_s12 = smov 0   ;;  %s895_s13 = smov 0  }
   0x5   :  { %s897_s14 = smov 0   ;;  %s899_s15 = smov 0  }
   0x6 LB: > { %s914_s16 = sadd.s32 4294967295, %s859_s15   ;;  %s546_s17 = sadd.s32 4294967294, %s859_s15   ;;  %s859_s15 = sphi %s899_s15, %s1208_s15   ;;  %s855_s14 = sphi %s897_s14, %s1207_s14   ;;  %s851_s13 = sphi %s895_s13, %s1206_s13   ;;  %s847_s12 = sphi %s893_s12, %s1205_s12  }
   0x7   : > { %p40_p0 = scmp.ne.s32.totalorder %s851_s13, %s847_s12  ;;  %p1183_p1 = scmp.eq.s32.totalorder %s914_s16, 0 }
   0x8   : > { %p112_p3 = scmp.eq.s32.totalorder %s546_s17, 1  ;;  %p547_p5 = scmp.ge.s32.totalorder %s859_s15, 1 }
   0x9   : > { %p923_p4 = por %p1183_p1, %p40_p0  ;;  %p119_p7 = scmp.lt.s32.totalorder %s859_s15, 3 }
   0xa   : > { %p928_p6 = por %p112_p3, %p40_p0  ;;  %s861_s21 = smov [#allocation5]  }
   0xb   : > { %s1186_s18 = scalar_select %p923_p4, 1, 0 }
   0xc   : > { %s1187_s19 = scalar_select %p928_p6, 1, 0 }
   0xd   : > { %p933_p8 = pnand %p547_p5, %p119_p7  ;;  %s132_s22 = sshll.u32 %s861_s21, 4  ;;  %s133_s22 = int_to_ptr.vmem [resolvable:$true] %s132_s22 }
   0xe   : > { %s862_s23 = smov [#allocation7]   ;;  %s949_s26 = sadd.s32 1, %s859_s15  }
   0xf   : > { %s1188_s20 = scalar_select %p933_p8, 1, 0 }
  0x10   : > { %p640_p10 = pneg %p933_p8  ;;  %s143_s24 = sshll.u32 %s862_s23, 4  ;;  %s946_s24 = int_to_ptr.vmem [resolvable:$true] %s143_s24 }
  0x11   : > { %s24_s27 = ssub.s32 %s859_s15, %s949_s26  ;;  %s703_s30 = scalar_lea.hbm %s1180_s1, 128 }
  0x12   : > { %p942_p11 = pnand %p640_p10, %p1183_p1  ;;  %p704_p12 = scmp.ne.s32.totalorder %s1180_s1, %s703_s30 }
  0x13   : > { %p710_p5 = scmp.lt.u32.totalorder %s703_s30, %s1180_s1 }
  0x14   : > { %p705_p13 = pneg %p942_p11 }
  0x16   : > { %p706_p0 = pnand %p705_p13, %p704_p12 }
  0x18   : > { %p707_p3 = pneg %p706_p0 }
  0x1a   : > { %p712_p7 = pnand %p710_p5, %p707_p3 }
  0x1c   : > { %715 = shalt.err (!%p712_p7)
}
  0x1d   : > { %s716_s8 = scalar_lea.vmem %s133_s22, 128  ;;  %p724_p2 = scmp.lt.s32.totalorder %s133_s22, %s133_s22 }
  0x1e   : > { %p717_p10 = scmp.ne.s32.totalorder %s133_s22, %s716_s8  ;;  %p725_p6 = scmp.lt.s32.totalorder %s716_s8, %s716_s8 }
  0x20   : > { %p719_p9 = pnand %p717_p10, %p705_p13  ;;  %p726_p4 = por %p725_p6, %p724_p2 }
  0x22   : > { %p720_p1 = pneg %p719_p9 }
  0x24   : > { %p727_p8 = pnand %p726_p4, %p720_p1 }
  0x26   : > { %730 = shalt.err (!%p727_p8)
}
  0x27   : > { %643 = dma.hbm_to_vmem [thread:$0]  (!%p942_p11), %s1180_s1, 128, %s133_s22, [#allocation6]  }
  0x28   : > { %s731_s21 = scalar_lea.hbm %s1181_s2, 128 }
  0x29   : > { %p732_p9 = scmp.ne.s32.totalorder %s1181_s2, %s731_s21  ;;  %p738_p4 = scmp.lt.u32.totalorder %s731_s21, %s1181_s2 }
  0x2b   : > { %p734_p2 = pnand %p732_p9, %p705_p13 }
  0x2d   : > { %p735_p1 = pneg %p734_p2 }
  0x2f   : > { %p740_p6 = pnand %p738_p4, %p735_p1 }
  0x31   : > { %743 = shalt.err (!%p740_p6)
}
  0x32   : > { %s744_s22 = scalar_lea.vmem %s946_s24, 128  ;;  %p752_p3 = scmp.lt.s32.totalorder %s946_s24, %s946_s24 }
  0x33   : > { %p745_p8 = scmp.ne.s32.totalorder %s946_s24, %s744_s22  ;;  %p753_p5 = scmp.lt.s32.totalorder %s744_s22, %s744_s22 }
  0x35   : > { %p747_p12 = pnand %p745_p8, %p705_p13  ;;  %p754_p7 = por %p753_p5, %p752_p3 }
  0x37   : > { %p748_p0 = pneg %p747_p12 }
  0x39   : > { %p755_p10 = pnand %p754_p7, %p748_p0 }
  0x3b   : > { %758 = shalt.err (!%p755_p10)
}
  0x3c   : > { %646 = dma.hbm_to_vmem [thread:$0]  (!%p942_p11), %s1181_s2, 128, %s946_s24, [#allocation6]  }
  0x3d   : > { %p25_p13 = scmp.eq.s32.totalorder %s24_s27, 0  ;;  %s27_s6 = sadd.s32 1, %s855_s14 }
  0x3e   : > { %p34_p9 = scmp.ne.s32.totalorder %s855_s14, %s851_s13  ;;  %p35_p2 = scmp.eq.s32.totalorder %s859_s15, 0 }
  0x3f   : > { %s1008_s25 = scalar_select %p25_p13, %s855_s14, %s27_s6  }
  0x40   : > { %p36_p1 = por %p35_p2, %p34_p9  ;;  %p1190_p4 = scmp.eq.s32.totalorder %s914_s16, 1 }
  0x41   : > { %p657_p8 = scmp.lt.s32.totalorder %s859_s15, 2  ;;  %s154_s8 = sand.u32 1, %s855_s14  }
  0x42   : > { %p1012_p6 = por %p1190_p4, %p34_p9  ;;  %s551_s9 = sshll.u32 %s154_s8, 3 }
  0x43   : > { %s552_s10 = sshll.u32 %s859_s15, 7  ;;  %s158_s27 = scalar_lea.vmem [#allocation2], %s551_s9 }
  0x44   : > { %s1022_s24 = scalar_lea.hbm %s1179_s0, %s552_s10  ;;  %s165_s21 = sshll.u32 %s158_s27, 4  ;;  %s1024_s21 = int_to_ptr.vmem [resolvable:$true] %s165_s21 }
  0x45   : > { %p1026_p11 = pnand %p657_p8, %p36_p1  ;;  %s155_s28 = scalar_lea.sflag [#allocation3], %s154_s8 }
  0x46   : > { %s759_s29 = scalar_lea.hbm %s1022_s24, 128  ;;  %s764_s4 = scalar_lea.hbm %s1179_s0, 256 }
  0x47   : > { %p760_p12 = scmp.ne.s32.totalorder %s1022_s24, %s759_s29  ;;  %p761_p0 = pneg %p1026_p11 }
  0x48   : > { %p765_p7 = scmp.lt.u32.totalorder %s1022_s24, %s1179_s0  ;;  %p766_p10 = scmp.lt.u32.totalorder %s764_s4, %s759_s29 }
  0x49   : > { %p762_p3 = pnand %p761_p0, %p760_p12  ;;  %p768_p9 = scmp.lt.u32.totalorder %s759_s29, %s1022_s24 }
  0x4a   : > { %p767_p13 = por %p766_p10, %p765_p7 }
  0x4b   : > { %p763_p5 = pneg %p762_p3 }
  0x4c   : > { %p769_p2 = por %p768_p9, %p767_p13 }
  0x4e   : > { %p770_p1 = pnand %p769_p2, %p763_p5 }
  0x50   : > { %773 = shalt.err (!%p770_p1)
}
  0x51   : > { %s774_s8 = scalar_lea.vmem %s1024_s21, 128  ;;  %s863_s9 = smov [#allocation2]  }
  0x52   : > { %p775_p4 = scmp.ne.s32.totalorder %s1024_s21, %s774_s8  ;;  %s779_s10 = sshll.u32 %s863_s9, 4  ;;  %s780_s10 = int_to_ptr.vmem [resolvable:$false] %s779_s10 }
  0x53   : > { %s781_s11 = scalar_lea.vmem %s780_s10, 256  ;;  %p782_p3 = scmp.lt.s32.totalorder %s1024_s21, %s780_s10 }
  0x54   : > { %p777_p8 = pnand %p775_p4, %p761_p0  ;;  %p783_p7 = scmp.lt.s32.totalorder %s781_s11, %s774_s8 }
  0x56   : > { %p778_p12 = pneg %p777_p8  ;;  %p784_p10 = por %p783_p7, %p782_p3 }
  0x58   : > { %p785_p13 = pnand %p784_p10, %p778_p12 }
  0x5a   : > { %788 = shalt.err (!%p785_p13)
}
  0x5b   : > { %650 = dma.hbm_to_vmem [thread:$0]  (!%p1026_p11), %s1022_s24, 128, %s1024_s21, %s155_s28  }
  0x5c   : > { %p1193_p5 = scmp.ne.s32.totalorder %s1188_s20, 0 }
  0x5d   : > { %s1058_s17 = sand.u32 (!%p1193_p5), 1, %s851_s13   ;;  %p1194_p0 = scmp.ne.s32.totalorder (!%p1193_p5), %s1186_s18, 0 }
  0x5e   : > { %174 = sbr.rel (%p1193_p5) target bundleno = 1272 (0x4f8), region = 32  ;;  %s554_s27 = sshll.u32 (!%p1193_p5), %s1058_s17, 3 }
  0x5f   : > { %s177_s29 = scalar_lea.sflag (!%p1193_p5), [#allocation3], %s1058_s17  ;;  %s180_s30 = scalar_lea.vmem (!%p1193_p5), [#allocation2], %s554_s27 }
  0x65   : > { %834 = dma.done.wait (%p1194_p0), %s177_s29, 128  }
  0x66   : > { %836 = vsyncadd (%p1194_p0), %s177_s29, 4294967168  ;;  %p1195_p11 = scmp.eq.s32.totalorder %s914_s16, 0 }
  0x68   : > { %838 = dma.done.wait (%p1195_p11), [#allocation6], 256   ;;  %p1196_p9 = pmov %p1195_p11 }
  0x69   : > { %v1072_v0 = vld [vmem:[%s180_s30] sm:$0xff]  ;;  %s864_s20 = smov 16   ;;  %vm231_vm0 = vcmask 1047680   ;;  %v865_v3 = vmov 0.0|0.0   ;;  %s866_s18 = smov 127   ;;  %vm868_vm1 = vmmov 0   ;;  %v213_v7 = vlaneseq }
  0x6a   : > { %840 = vsyncadd (%p1196_p9), [#allocation6], 4294967040  ;;  %232 = vrot.lane.b32.xlu0 %v1072_v0, %s864_s20  ;;  %612 = vmatprep.subr.bf16.mxu0 %v865_v3  ;;  %s867_s24 = smov 114   ;;  %v869_v6 = vmov 0.0   ;;  %s870_s21 = smov 113   ;;  %v211_v17 = vld [vmem:[#allocation5] sm:$0xff] }
  0x6b   : > { %620 = vmatprep.subr.bf16.mxu1 %v865_v3  ;;  %596 = vmatprep.mubr.msk.f32.mxu0 %vm868_vm1, %v869_v6  ;;  %s871_s23 = smov 126   ;;  %v214_v8 = vand.u32 127, %v213_v7  ;;  %vm266_vm13 = vcmask 326656   ;;  %v212_v31 = vld [vmem:[#allocation7] sm:$0xff]  ;;  %s571_s28 = sshll.u32 %s914_s16, 7  ;;  %vm441_vm14 = vcmask 130048  }
  0x6c   : > { %609 = vmatprep.mubr.msk.f32.mxu1 %vm868_vm1, %v869_v6  ;;  %s210_s22 = scalar_lea.vmem [#allocation8], %s554_s27  ;;  %s1135_s8 = scalar_lea.hbm %s1182_s3, %s571_s28 }
  0x6d   : > { %vm215_vm2 = vcmp.ge.s32.totalorder %v214_v8, 2  ;;  %vm216_vm3 = vcmp.lt.s32.totalorder %v214_v8, 18  ;;  %vm218_vm4 = vcmp.ge.s32.totalorder %v214_v8, 1  ;;  %vm219_vm5 = vcmp.lt.s32.totalorder %v214_v8, 17  ;;  %s457_s4 = sshll.u32 %s210_s22, 4  ;;  %s444_s9 = scalar_lea.sflag [#allocation4], %s1058_s17  ;;  %s1137_s4 = int_to_ptr.vmem [resolvable:$true] %s457_s4 }
  0x6e   : > { %vm1085_vm6 = vmand %vm215_vm2, %vm216_vm3  ;;  %vm222_vm9 = vcmp.lt.s32.totalorder %v214_v8, 16  ;;  %vm225_vm10 = vcmp.lt.s32.totalorder %v214_v8, 15  ;;  %vm228_vm12 = vcmp.lt.s32.totalorder %v214_v8, 14  ;;  %s789_s16 = scalar_lea.vmem %s1137_s4, 128  ;;  %s872_s10 = smov [#allocation8]  }
  0x6f   : > { %vm1089_vm7 = vmand %vm218_vm4, %vm219_vm5  ;;  %p790_p2 = scmp.ne.s32.totalorder %s1137_s4, %s789_s16  ;;  %s793_s11 = sshll.u32 %s872_s10, 4  ;;  %s794_s11 = int_to_ptr.vmem [resolvable:$false] %s793_s11 }
  0x70   : > { %vm614_vm8 = vmpackc.low %vm1089_vm7, %vm1085_vm6  ;;  %s795_s27 = scalar_lea.vmem %s794_s11, 256  ;;  %p796_p8 = scmp.lt.s32.totalorder %s1137_s4, %s794_s11 }
  0x71   : > { %vm1102_vm11 = vmpackc.low %vm225_vm10, %vm222_vm9  ;;  %p791_p1 = pnand %p790_p2, %p1012_p6  ;;  %p797_p12 = scmp.lt.s32.totalorder %s795_s27, %s789_s16 }
  0x73   : > { %p792_p4 = pneg %p791_p1  ;;  %p798_p3 = por %p797_p12, %p796_p8 }
  0x75   : > { %p799_p7 = pnand %p798_p3, %p792_p4 }
  0xdc   : > { %v233_v1 = vpop.permute.xlu0 %232 }
  0xdd   : > { %v234_v2 = vsel %vm231_vm0, %v233_v1, %v1072_v0 }
  0xde   : > { %235 = vrot.lane.b32.xlu0 %v234_v2, %s864_s20 }
 0x150   : > { %v236_v4 = vpop.permute.xlu0 %235 }
 0x151   : > { %v237_v5 = vsel %vm231_vm0, %v236_v4, %v1072_v0 }
 0x152   : > { %256 = vrot.lane.b32.xlu0 %v237_v5, %s866_s18  ;;  %241 = vrot.lane.b32.xlu1 %v237_v5, %s867_s24 }
 0x156   : > { %247 = vrot.lane.b32.xlu1 %v237_v5, %s870_s21 }
 0x15a   : > { %262 = vrot.lane.b32.xlu1 %v237_v5, %s871_s23 }
 0x1c4   : > { %v242_v9 = vpop.permute.xlu1 %241  ;;  %v257_v14 = vpop.permute.xlu0 %256 }
 0x1c5   : > { %v617_v16 = vpack.c.bf16 %v257_v14, %v1072_v0 }
 0x1c8   : > { %v248_v12 = vpop.permute.xlu1 %247 }
 0x1c9   : > { %v613_v13 = vpack.c.bf16 %v248_v12, %v242_v9 }
 0x1cb   : > { %615 = vmatpush3.bf16.msk.msra.mxu0 %vm614_vm8, %v613_v13 }
 0x1cc   : > { %616 = vmatprep.subr.bf16.mxu0 %v865_v3  ;;  %v263_v18 = vpop.permute.xlu1 %262 }
 0x1cf   : > { %619 = vmatpush3.bf16.msk.msra.mxu0 %vm1102_vm11, %v617_v16 }
 0x1d0   : > { %594 = vmatprep.subr.mxu0 %v869_v6 }
 0x1d3   : > { %595 = vmatpush3.msk.msra.mxu0 %vm228_vm12, %v263_v18 }
 0x1d4   : > { %597 = vmatmul.mubr.msk.f32.vlgmr.msra.gmra.mrb[0].mxu0 %vm266_vm13, %v211_v17 }
 0x2a7   : > { %v336_v19 = vpop.f32.mrb[0].mxu0 }
 0x2a8   : > { %v340_v20 = vmax.f32 %v336_v19, 0.0  ;;  %v598_v21 = vpop.f32.mrb[1].mxu0 }
 0x2aa   : > { %341 = vrot.lane.b32.xlu0 %v340_v20, %s864_s20 }
 0x31c   : > { %v342_v22 = vpop.permute.xlu0 %341 }
 0x31d   : > { %v343_v23 = vsel %vm231_vm0, %v342_v22, %v340_v20 }
 0x31e   : > { %344 = vrot.lane.b32.xlu1 %v343_v23, %s864_s20 }
 0x390   : > { %v345_v24 = vpop.permute.xlu1 %344 }
 0x391   : > { %v346_v25 = vsel %vm231_vm0, %v345_v24, %v340_v20 }
 0x392   : > { %352 = vrot.lane.b32.xlu1 %v346_v25, %s870_s21  ;;  %348 = vrot.lane.b32.xlu0 %v346_v25, %s867_s24 }
 0x396   : > { %361 = vrot.lane.b32.xlu1 %v346_v25, %s871_s23  ;;  %357 = vrot.lane.b32.xlu0 %v346_v25, %s866_s18 }
 0x404   : > { %v353_v26 = vpop.permute.xlu1 %352  ;;  %v349_v27 = vpop.permute.xlu0 %348 }
 0x405   : > { %v621_v28 = vpack.c.bf16 %v353_v26, %v349_v27 }
 0x407   : > { %623 = vmatpush3.bf16.msk.msra.mxu1 %vm614_vm8, %v621_v28 }
 0x408   : > { %v358_v29 = vpop.permute.xlu0 %357  ;;  %624 = vmatprep.subr.bf16.mxu1 %v865_v3  ;;  %v362_v32 = vpop.permute.xlu1 %361 }
 0x409   : > { %v625_v30 = vpack.c.bf16 %v358_v29, %v340_v20 }
 0x40b   : > { %627 = vmatpush3.bf16.msk.msra.mxu1 %vm1102_vm11, %v625_v30 }
 0x40c   : > { %607 = vmatprep.subr.mxu1 %v869_v6 }
 0x40f   : > { %608 = vmatpush3.msk.msra.mxu1 %vm228_vm12, %v362_v32 }
 0x410   : > { %610 = vmatmul.mubr.msk.f32.vlgmr.msra.gmra.mrb[0].mxu1 %vm266_vm13, %v212_v31 }
 0x4e3   : > { %v434_v33 = vpop.f32.mrb[0].mxu1 }
 0x4e4   : > { %v438_v34 = vmax.f32 %v434_v33, 0.0  ;;  %v611_v35 = vpop.f32.mrb[1].mxu1 }
 0x4e6   : > { %v439_v36 = vadd.f32 %v438_v34, %v1072_v0 }
 0x4e8   : > { %v440_v37 = vmax.f32 %v439_v36, 0.0 }
 0x4ea   : > { %442 = vst.msk [vmem:[%s210_s22] sm:$0xff] %vm441_vm14, %v440_v37 }
 0x4eb   : > { %802 = shalt.err (!%p799_p7)
}
 0x4ec   : > { %s803_s17 = scalar_lea.hbm %s1135_s8, 128  ;;  %s807_s20 = scalar_lea.hbm %s1182_s3, 256 }
 0x4ed   : > { %p804_p10 = scmp.ne.s32.totalorder %s1135_s8, %s803_s17  ;;  %p808_p0 = scmp.lt.u32.totalorder %s1135_s8, %s1182_s3 }
 0x4ee   : > { %p809_p11 = scmp.lt.u32.totalorder %s807_s20, %s803_s17  ;;  %p811_p2 = scmp.lt.u32.totalorder %s803_s17, %s1135_s8 }
 0x4ef   : > { %p805_p13 = pnand %p804_p10, %p1012_p6 }
 0x4f0   : > { %p810_p9 = por %p809_p11, %p808_p0 }
 0x4f1   : > { %p806_p5 = pneg %p805_p13 }
 0x4f2   : > { %p812_p1 = por %p811_p2, %p810_p9 }
 0x4f4   : > { %p813_p4 = pnand %p812_p1, %p806_p5 }
 0x4f6   : > { %816 = shalt.err (!%p813_p4)
}
 0x4f7   : > { %638 = dma.vmem_to_hbm [thread:$0]  (%p1012_p6), %s1137_s4, 128, %s1135_s8, %s444_s9  }
 0x4f8 PF: > { %s469_s21 = sand.u32 1, %s847_s12   ;;  %p1203_p8 = scmp.ne.s32.totalorder %s1187_s19, 0 }
 0x4f9   : > { %p1204_p12 = scmp.ge.s32.totalorder %s859_s15, 2  ;;  %s470_s23 = scalar_lea.sflag [#allocation4], %s469_s21 }
 0x4fb   : > { %p652_p3 = pnand %p1204_p12, %p1203_p8 }
 0x4fd   : > { %842 = dma.done.wait (!%p652_p3), %s470_s23, 128  }
 0x4fe   : > { %844 = vsyncadd (!%p652_p3), %s470_s23, 4294967168  ;;  %p17_p7 = scmp.ge.s32.totalorder %s949_s26, 4   ;;  %s1205_s12 = smov %s851_s13 }
 0x4ff   : > { %s1206_s13 = smov %s855_s14  ;;  %s1207_s14 = smov %s1008_s25 }
 0x500   : > { %s1208_s15 = smov %s949_s26  ;;  %19 = sbr.rel (!%p17_p7) target bundleno = 6 (0x6), region = 85 }
 0x507   :  { %475 = vsyncpa [#allocation3], 1 }
 0x508   :  { %477 = vsyncpa [#allocation3 + $0x1], 1 }
 0x509   :  { %478 = vsyncpa [#allocation6], 1 }
 0x50a   :  { %479 = vsyncpa [#allocation4], 1 }
 0x50b   :  { %481 = vsyncpa [#allocation4 + $0x1], 1 }

</bundles_post_ra>
